<compile_context>
chip_gen: v7x
topology: tpu7x:2x2x1
jax: 0.10.0
libtpu: 0.0.40
codegen_flags: <defaults>
</compile_context>

<pallas_src>
import jax
import jax.numpy as jnp
from jax.experimental import pallas as pl
from jax.experimental.pallas import tpu as pltpu


def make_rnn_kernel(t_block: int, batch: int):
    """Build a kernel that runs `t_block` RNN steps per grid iteration."""

    def kernel(x_ref, wih_t_ref, whh_t_ref, b_ref, out_ref, h_ref):
        tb = pl.program_id(0)

        # h_0 = zeros (the module rebuilds a zero hidden state each forward).
        @pl.when(tb == 0)
        def _():
            h_ref[...] = jnp.zeros_like(h_ref)

        # Input projection for ALL t_block steps as a single MXU GEMM,
        # with the folded bias added once (off the serial critical path).
        xp = (
            jnp.dot(x_ref[...], wih_t_ref[...], preferred_element_type=jnp.float32)
            + b_ref[...]
        )  # (t_block * batch, hidden), f32

        w_hh_t = whh_t_ref[...]  # (hidden, hidden), already transposed
        h = h_ref[...]           # (batch, hidden), f32 running state

        # Fully unrolled recurrence with static slices; only h @ W_hh^T + tanh
        # remains on the serial path.
        outs = []
        for i in range(t_block):
            pre = xp[i * batch:(i + 1) * batch, :] + jnp.dot(
                h, w_hh_t, preferred_element_type=jnp.float32
            )
            h = jnp.tanh(pre)
            outs.append(h)

        # One dense store of the whole (t_block*batch, hidden) output slab.
        out_ref[...] = jnp.concatenate(outs, axis=0).astype(out_ref.dtype)
        h_ref[...] = h

    return kernel


def _pick_t_block(seq_len: int, cap: int = 32) -> int:
    """Largest divisor of seq_len that is <= cap (whole sequence if small)."""
    tb = min(seq_len, cap)
    while seq_len % tb != 0:
        tb -= 1
    return tb


def rnn_forward(x, w_ih, w_hh, b_ih, b_hh, t_block=None):
    """x: (seq_len, batch, input_size). Returns (seq_len*batch, hidden_size)."""
    seq_len, batch, input_size = x.shape
    hidden_size = w_ih.shape[0]

    if t_block is None:
        t_block = _pick_t_block(seq_len)
    num_blocks = seq_len // t_block
    rows = t_block * batch

    # Host-side (one-time) weight prep: transpose weights, fold the two biases.
    x2 = x.reshape(seq_len * batch, input_size)       # lane-dense 2-D layout
    w_ih_t = jnp.transpose(w_ih)                      # (input_size, hidden)
    w_hh_t = jnp.transpose(w_hh)                      # (hidden, hidden)
    bias = (b_ih + b_hh).reshape(1, hidden_size)      # single folded bias

    # TODO(synk): for realistic sizes (hidden % 128 == 0, batch > 1) add a
    # parallel batch grid axis (v7x second TC) and bf16 weights for the MXU.
    out = pl.pallas_call(
        make_rnn_kernel(t_block, batch),
        out_shape=jax.ShapeDtypeStruct((seq_len * batch, hidden_size), x.dtype),
        grid_spec=pltpu.PrefetchScalarGridSpec(
            num_scalar_prefetch=0,
            grid=(num_blocks,),
            in_specs=[
                pl.BlockSpec((rows, input_size), lambda tb: (tb, 0)),
                pl.BlockSpec((input_size, hidden_size), lambda tb: (0, 0)),
                pl.BlockSpec((hidden_size, hidden_size), lambda tb: (0, 0)),
                pl.BlockSpec((1, hidden_size), lambda tb: (0, 0)),
            ],
            out_specs=pl.BlockSpec((rows, hidden_size), lambda tb: (tb, 0)),
            scratch_shapes=[pltpu.VMEM((batch, hidden_size), jnp.float32)],
        ),
        compiler_params=pltpu.CompilerParams(
            dimension_semantics=("arbitrary",),  # time blocks are sequential
        ),
    )(x2, w_ih_t, w_hh_t, bias)

    # Already (seq_len*batch, hidden) == out.view(-1, hidden_size).
    return out


if __name__ == "__main__":
    batch_size = 1
    hidden_size = 4
    input_size = 4
    num_layers = 1  # single-layer RNN
    seq_len = 8

    key = jax.random.PRNGKey(0)
    k_x, k_wih, k_whh, k_bih, k_bhh = jax.random.split(key, 5)

    # PyTorch nn.RNN default init: U(-1/sqrt(hidden_size), 1/sqrt(hidden_size))
    bound = 1.0 / (hidden_size ** 0.5)
    w_ih = jax.random.uniform(k_wih, (hidden_size, input_size), jnp.float32, -bound, bound)
    w_hh = jax.random.uniform(k_whh, (hidden_size, hidden_size), jnp.float32, -bound, bound)
    b_ih = jax.random.uniform(k_bih, (hidden_size,), jnp.float32, -bound, bound)
    b_hh = jax.random.uniform(k_bhh, (hidden_size,), jnp.float32, -bound, bound)

    x = jax.random.normal(k_x, (seq_len, batch_size, input_size), jnp.float32)

    out = rnn_forward(x, w_ih, w_hh, b_ih, b_hh)
    out = jax.block_until_ready(out)

    # Pure-JAX reference for sanity.
    def ref_rnn(x, w_ih, w_hh, b_ih, b_hh):
        h = jnp.zeros((batch_size, hidden_size), jnp.float32)
        outs = []
        for t in range(x.shape[0]):
            h = jnp.tanh(x[t] @ w_ih.T + b_ih + h @ w_hh.T + b_hh)
            outs.append(h)
        return jnp.stack(outs).reshape(-1, hidden_size)

    ref = ref_rnn(x, w_ih, w_hh, b_ih, b_hh)
    assert out.shape == (seq_len * batch_size, hidden_size)
    assert jnp.allclose(out, ref, atol=1e-5, rtol=1e-5)

    print("KERNEL_OK")
</pallas_src>

<mosaic_0001>
module attributes {stable_mosaic.version = 11 : i64} {
  func.func @kernel(%arg0: i32, %arg1: memref<8x4xf32, #tpu.memory_space<vmem>>, %arg2: memref<4x4xf32, #tpu.memory_space<vmem>>, %arg3: memref<4x4xf32, #tpu.memory_space<vmem>>, %arg4: memref<1x4xf32, #tpu.memory_space<vmem>>, %arg5: memref<8x4xf32, #tpu.memory_space<vmem>>, %arg6: memref<1x4xf32, #tpu.memory_space<vmem>>) attributes {dimension_semantics = [#tpu.dimension_semantics<arbitrary>], iteration_bounds = array<i64: 1>, scalar_prefetch = 0 : i64, scratch_operands = 1 : i64, tpu.core_type = #tpu.core_type<tc>, window_params = [{transform_indices = @transform_0, window_bounds = array<i64: 8, 4>}, {pipeline_mode = #tpu.pipeline_mode<synchronous>, transform_indices = @transform_1, window_bounds = array<i64: 4, 4>}, {pipeline_mode = #tpu.pipeline_mode<synchronous>, transform_indices = @transform_2, window_bounds = array<i64: 4, 4>}, {pipeline_mode = #tpu.pipeline_mode<synchronous>, transform_indices = @transform_3, window_bounds = array<i64: 1, 4>}, {transform_indices = @transform_4, window_bounds = array<i64: 8, 4>}]} {
    %c0_i32 = arith.constant 0 : i32
    %0 = arith.cmpi eq, %arg0, %c0_i32 : i32
    %1 = arith.extui %0 : i1 to i32
    %c0_i32_0 = arith.constant 0 : i32
    %2 = arith.cmpi ne, %1, %c0_i32_0 : i32
    scf.if %2 {
      %cst_22 = arith.constant 0.000000e+00 : f32
      %46 = vector.broadcast %cst_22 : f32 to vector<1x4xf32>
      %c0_23 = arith.constant 0 : index
      %c0_24 = arith.constant 0 : index
      %47 = vector.load %arg6[%c0_23, %c0_24] : memref<1x4xf32, #tpu.memory_space<vmem>>, vector<1x4xf32>
      tpu.vector_store %arg6[%c0_23, %c0_24], %46 {strides = array<i32>} : memref<1x4xf32, #tpu.memory_space<vmem>>, vector<1x4xf32>,
    } else {
    }
    %c0 = arith.constant 0 : index
    %c0_1 = arith.constant 0 : index
    %3 = vector.load %arg1[%c0, %c0_1] : memref<8x4xf32, #tpu.memory_space<vmem>>, vector<8x4xf32>
    %c0_2 = arith.constant 0 : index
    %c0_3 = arith.constant 0 : index
    %4 = vector.load %arg2[%c0_2, %c0_3] : memref<4x4xf32, #tpu.memory_space<vmem>>, vector<4x4xf32>
    %cst = arith.constant dense<0.000000e+00> : vector<8x4xf32>
    %5 = tpu.matmul %3, %4, %cst {dimension_numbers = #tpu.dot_dimension_numbers<[1], [0], [0], [1], [0, 0, 1, 1], [], []>} : vector<8x4xf32>, vector<4x4xf32>, vector<8x4xf32> -> vector<8x4xf32>
    %c0_4 = arith.constant 0 : index
    %c0_5 = arith.constant 0 : index
    %6 = vector.load %arg4[%c0_4, %c0_5] : memref<1x4xf32, #tpu.memory_space<vmem>>, vector<1x4xf32>
    %7 = vector.broadcast %6 : vector<1x4xf32> to vector<8x4xf32>
    %8 = arith.addf %5, %7 : vector<8x4xf32>
    %c0_6 = arith.constant 0 : index
    %c0_7 = arith.constant 0 : index
    %9 = vector.load %arg3[%c0_6, %c0_7] : memref<4x4xf32, #tpu.memory_space<vmem>>, vector<4x4xf32>
    %c0_8 = arith.constant 0 : index
    %c0_9 = arith.constant 0 : index
    %10 = vector.load %arg6[%c0_8, %c0_9] : memref<1x4xf32, #tpu.memory_space<vmem>>, vector<1x4xf32>
    %11 = vector.extract_strided_slice %8 {offsets = [0, 0], sizes = [1, 4], strides = [1, 1]} : vector<8x4xf32> to vector<1x4xf32>
    %cst_10 = arith.constant dense<0.000000e+00> : vector<1x4xf32>
    %12 = tpu.matmul %10, %9, %cst_10 {dimension_numbers = #tpu.dot_dimension_numbers<[1], [0], [0], [1], [0, 0, 1, 1], [], []>} : vector<1x4xf32>, vector<4x4xf32>, vector<1x4xf32> -> vector<1x4xf32>
    %13 = arith.addf %11, %12 : vector<1x4xf32>
    %14 = math.tanh %13 : vector<1x4xf32>
    %15 = vector.extract_strided_slice %8 {offsets = [1, 0], sizes = [1, 4], strides = [1, 1]} : vector<8x4xf32> to vector<1x4xf32>
    %cst_11 = arith.constant dense<0.000000e+00> : vector<1x4xf32>
    %16 = tpu.matmul %14, %9, %cst_11 {dimension_numbers = #tpu.dot_dimension_numbers<[1], [0], [0], [1], [0, 0, 1, 1], [], []>} : vector<1x4xf32>, vector<4x4xf32>, vector<1x4xf32> -> vector<1x4xf32>
    %17 = arith.addf %15, %16 : vector<1x4xf32>
    %18 = math.tanh %17 : vector<1x4xf32>
    %19 = vector.extract_strided_slice %8 {offsets = [2, 0], sizes = [1, 4], strides = [1, 1]} : vector<8x4xf32> to vector<1x4xf32>
    %cst_12 = arith.constant dense<0.000000e+00> : vector<1x4xf32>
    %20 = tpu.matmul %18, %9, %cst_12 {dimension_numbers = #tpu.dot_dimension_numbers<[1], [0], [0], [1], [0, 0, 1, 1], [], []>} : vector<1x4xf32>, vector<4x4xf32>, vector<1x4xf32> -> vector<1x4xf32>
    %21 = arith.addf %19, %20 : vector<1x4xf32>
    %22 = math.tanh %21 : vector<1x4xf32>
    %23 = vector.extract_strided_slice %8 {offsets = [3, 0], sizes = [1, 4], strides = [1, 1]} : vector<8x4xf32> to vector<1x4xf32>
    %cst_13 = arith.constant dense<0.000000e+00> : vector<1x4xf32>
    %24 = tpu.matmul %22, %9, %cst_13 {dimension_numbers = #tpu.dot_dimension_numbers<[1], [0], [0], [1], [0, 0, 1, 1], [], []>} : vector<1x4xf32>, vector<4x4xf32>, vector<1x4xf32> -> vector<1x4xf32>
    %25 = arith.addf %23, %24 : vector<1x4xf32>
    %26 = math.tanh %25 : vector<1x4xf32>
    %27 = vector.extract_strided_slice %8 {offsets = [4, 0], sizes = [1, 4], strides = [1, 1]} : vector<8x4xf32> to vector<1x4xf32>
    %cst_14 = arith.constant dense<0.000000e+00> : vector<1x4xf32>
    %28 = tpu.matmul %26, %9, %cst_14 {dimension_numbers = #tpu.dot_dimension_numbers<[1], [0], [0], [1], [0, 0, 1, 1], [], []>} : vector<1x4xf32>, vector<4x4xf32>, vector<1x4xf32> -> vector<1x4xf32>
    %29 = arith.addf %27, %28 : vector<1x4xf32>
    %30 = math.tanh %29 : vector<1x4xf32>
    %31 = vector.extract_strided_slice %8 {offsets = [5, 0], sizes = [1, 4], strides = [1, 1]} : vector<8x4xf32> to vector<1x4xf32>
    %cst_15 = arith.constant dense<0.000000e+00> : vector<1x4xf32>
    %32 = tpu.matmul %30, %9, %cst_15 {dimension_numbers = #tpu.dot_dimension_numbers<[1], [0], [0], [1], [0, 0, 1, 1], [], []>} : vector<1x4xf32>, vector<4x4xf32>, vector<1x4xf32> -> vector<1x4xf32>
    %33 = arith.addf %31, %32 : vector<1x4xf32>
    %34 = math.tanh %33 : vector<1x4xf32>
    %35 = vector.extract_strided_slice %8 {offsets = [6, 0], sizes = [1, 4], strides = [1, 1]} : vector<8x4xf32> to vector<1x4xf32>
    %cst_16 = arith.constant dense<0.000000e+00> : vector<1x4xf32>
    %36 = tpu.matmul %34, %9, %cst_16 {dimension_numbers = #tpu.dot_dimension_numbers<[1], [0], [0], [1], [0, 0, 1, 1], [], []>} : vector<1x4xf32>, vector<4x4xf32>, vector<1x4xf32> -> vector<1x4xf32>
    %37 = arith.addf %35, %36 : vector<1x4xf32>
    %38 = math.tanh %37 : vector<1x4xf32>
    %39 = vector.extract_strided_slice %8 {offsets = [7, 0], sizes = [1, 4], strides = [1, 1]} : vector<8x4xf32> to vector<1x4xf32>
    %cst_17 = arith.constant dense<0.000000e+00> : vector<1x4xf32>
    %40 = tpu.matmul %38, %9, %cst_17 {dimension_numbers = #tpu.dot_dimension_numbers<[1], [0], [0], [1], [0, 0, 1, 1], [], []>} : vector<1x4xf32>, vector<4x4xf32>, vector<1x4xf32> -> vector<1x4xf32>
    %41 = arith.addf %39, %40 : vector<1x4xf32>
    %42 = math.tanh %41 : vector<1x4xf32>
    %43 = tpu.concatenate %14, %18, %22, %26, %30, %34, %38, %42 in 0 : vector<1x4xf32>, vector<1x4xf32>, vector<1x4xf32>, vector<1x4xf32>, vector<1x4xf32>, vector<1x4xf32>, vector<1x4xf32>, vector<1x4xf32> -> vector<8x4xf32>
    %c0_18 = arith.constant 0 : index
    %c0_19 = arith.constant 0 : index
    %44 = vector.load %arg5[%c0_18, %c0_19] : memref<8x4xf32, #tpu.memory_space<vmem>>, vector<8x4xf32>
    tpu.vector_store %arg5[%c0_18, %c0_19], %43 {strides = array<i32>} : memref<8x4xf32, #tpu.memory_space<vmem>>, vector<8x4xf32>,
    %c0_20 = arith.constant 0 : index
    %c0_21 = arith.constant 0 : index
    %45 = vector.load %arg6[%c0_20, %c0_21] : memref<1x4xf32, #tpu.memory_space<vmem>>, vector<1x4xf32>
    tpu.vector_store %arg6[%c0_20, %c0_21], %42 {strides = array<i32>} : memref<1x4xf32, #tpu.memory_space<vmem>>, vector<1x4xf32>,
    return
  }
  func.func @transform_0(%arg0: i32) -> (i32, i32) {
    %c0_i32 = arith.constant 0 : i32
    %c0_i32_0 = arith.constant 0 : i32
    return %arg0, %c0_i32 : i32, i32
  }
  func.func @transform_1(%arg0: i32) -> (i32, i32) {
    %c0_i32 = arith.constant 0 : i32
    %c0_i32_0 = arith.constant 0 : i32
    %c0_i32_1 = arith.constant 0 : i32
    return %c0_i32, %c0_i32_0 : i32, i32
  }
  func.func @transform_2(%arg0: i32) -> (i32, i32) {
    %c0_i32 = arith.constant 0 : i32
    %c0_i32_0 = arith.constant 0 : i32
    %c0_i32_1 = arith.constant 0 : i32
    return %c0_i32, %c0_i32_0 : i32, i32
  }
  func.func @transform_3(%arg0: i32) -> (i32, i32) {
    %c0_i32 = arith.constant 0 : i32
    %c0_i32_0 = arith.constant 0 : i32
    %c0_i32_1 = arith.constant 0 : i32
    return %c0_i32, %c0_i32_0 : i32, i32
  }
  func.func @transform_4(%arg0: i32) -> (i32, i32) {
    %c0_i32 = arith.constant 0 : i32
    %c0_i32_0 = arith.constant 0 : i32
    return %arg0, %c0_i32 : i32, i32
  }
}

</mosaic_0001>

<bundles_post_ra>
// kernel: tpu_custom_call.1
= control target key start
LH: loop header
LB: loop body
LE: loop exit
PB: predicated region body
PF: predicated region fallthrough
CT: control target
= control target key end

     0   :  { %vm36_vm0 = vcmask 1043456   ;;  %vm32_vm1 = vcmask 31744   ;;  %v862_v0 = vmov 0.0   ;;  %vm863_vm2 = vmmov 0   ;;  %s972_s1 = inlined_call_operand.vmem [shape: f32[4,4], index: 1, kind: input, shape index: {}]   ;;  %s973_s0 = inlined_call_operand.vmem [shape: f32[8,4], index: 0, kind: input, shape index: {}]   ;;  %s974_s2 = inlined_call_operand.vmem [shape: f32[4,4], index: 2, kind: input, shape index: {}]   ;;  %s975_s3 = inlined_call_operand.vmem [shape: f32[1,4], index: 3, kind: input, shape index: {}]   ;;  %s976_s4 = inlined_call_operand.vmem [shape: f32[8,4], index: 4, kind: output, shape index: {}]  }
   0x1   :  { %799 = vmatprep.subr.mxu0 %v862_v0  ;;  %v24_v1 = vld [vmem:[%s972_s1] sm:$0xf]  ;;  %801 = vmatprep.mubr.msk.f32.mxu0 %vm863_vm2, %v862_v0  ;;  %vm21_vm3 = vcmask 24576   ;;  %vm742_vm4 = vcmask 1040384   ;;  %vm744_vm5 = vcmask 1041408   ;;  %vm746_vm6 = vcmask 1042432  }
   0x2   :  { %v23_v2 = vld [vmem:[%s973_s0] sm:$0xff]  ;;  %800 = vmatpush3.msk.msra.mxu0 %vm36_vm0, %v24_v1  ;;  %804 = vmatprep.subr.mxu1 %v862_v0  ;;  %22 = vst.msk [vmem:[#allocation2] sm:$0x1] %vm21_vm3, %v862_v0  ;;  %vm749_vm7 = vcmask 1044480   ;;  %vm751_vm8 = vcmask 1045504   ;;  %vm753_vm9 = vcmask 1046528  }
   0x3   :  { %v901_v3 = vld [vmem:[%s974_s2] sm:$0xf]  ;;  %802 = vmatmul.mubr.msk.f32.vlgmr.msra.gmra.mrb[0].mxu0 %vm32_vm1, %v23_v2  ;;  %806 = vmatprep.mubr.msk.f32.mxu1 %vm863_vm2, %v862_v0  ;;  %vm756_vm10 = vcmask 31751  }
   0x4   :  { %805 = vmatpush3.msk.msra.mxu1 %vm36_vm0, %v901_v3  ;;  %809 = vmatprep.subr.mxu0 %v862_v0  ;;  %v762_v6 = vld [vmem:[%s975_s3] ss:$0 sm:$0xff] }
   0x5   :  { %810 = vmatpush3.msk.msra.mxu0 %vm36_vm0, %v901_v3  ;;  %811 = vmatprep.mubr.msk.f32.mxu0 %vm863_vm2, %v862_v0 }
   0x6   :  { %814 = vmatprep.subr.mxu1 %v862_v0  ;;  %819 = vmatprep.subr.mxu0 %v862_v0 }
   0x9   :  { %v111_v4 = vld [vmem:[#allocation2] sm:$0x1] }
   0xa   :  { %807 = vmatmul.mubr.msk.f32.vlgmr.msra.gmra.mrb[0].mxu1 %vm32_vm1, %v111_v4 }
   0xb   :  { %815 = vmatpush3.msk.msra.mxu1 %vm36_vm0, %v901_v3  ;;  %816 = vmatprep.mubr.msk.f32.mxu1 %vm863_vm2, %v862_v0 }
   0xc   :  { %824 = vmatprep.subr.mxu1 %v862_v0 }
  0xd6   :  { %v106_v5 = vpop.f32.mrb[0].mxu0 }
  0xd7   :  { %v803_v7 = vpop.f32.mrb[1].mxu0  ;;  %v927_v8 = vadd.f32 %v762_v6, %v106_v5 }
  0xdd   :  { %v184_v9 = vpop.f32.mrb[0].mxu1 }
  0xde   :  { %v188_v10 = vadd.f32 %v184_v9, %v927_v8  ;;  %v808_v11 = vpop.f32.mrb[1].mxu1 }
  0xe0   :  { %846 = vtanh.f32 %v188_v10 }
  0xea   :  { %v847_v12 = vpop.eup %846 }
  0xeb   :  { %812 = vmatmul.mubr.msk.f32.vlgmr.msra.gmra.mrb[2].mxu0 %vm32_vm1, %v847_v12 }
  0xec   :  { %820 = vmatpush3.msk.msra.mxu0 %vm36_vm0, %v901_v3  ;;  %821 = vmatprep.mubr.msk.f32.mxu0 %vm863_vm2, %v862_v0 }
  0xed   :  { %829 = vmatprep.subr.mxu0 %v862_v0 }
 0x1be   :  { %v259_v13 = vpop.f32.mrb[2].mxu0 }
 0x1bf   :  { %v264_v14 = vrot.slane %v259_v13, 7  ;;  %v813_v15 = vpop.f32.mrb[3].mxu0 }
 0x1c1   :  { %v266_v16 = vadd.f32 %v264_v14, %v927_v8 }
 0x1c3   :  { %848 = vtanh.f32 %v266_v16 }
 0x1cd   :  { %v849_v17 = vpop.eup %848 }
 0x1ce   :  { %v269_v18 = vrot.slane %v849_v17, 1  ;;  %v743_v24 = vsel %vm742_vm4, %v847_v12, %v849_v17 }
 0x1d0   :  { %817 = vmatmul.mubr.msk.f32.vlgmr.msra.gmra.mrb[2].mxu1 %vm32_vm1, %v269_v18 }
 0x1d1   :  { %825 = vmatpush3.msk.msra.mxu1 %vm36_vm0, %v901_v3  ;;  %826 = vmatprep.mubr.msk.f32.mxu1 %vm863_vm2, %v862_v0 }
 0x1d2   :  { %834 = vmatprep.subr.mxu1 %v862_v0 }
 0x2a3   :  { %v338_v19 = vpop.f32.mrb[2].mxu1 }
 0x2a4   :  { %v343_v20 = vrot.slane %v338_v19, 6  ;;  %v818_v21 = vpop.f32.mrb[3].mxu1 }
 0x2a6   :  { %v345_v22 = vadd.f32 %v343_v20, %v927_v8 }
 0x2a8   :  { %850 = vtanh.f32 %v345_v22 }
 0x2b2   :  { %v851_v23 = vpop.eup %850 }
 0x2b3   :  { %v745_v25 = vsel %vm744_vm5, %v743_v24, %v851_v23  ;;  %v348_v26 = vrot.slane %v851_v23, 2 }
 0x2b5   :  { %822 = vmatmul.mubr.msk.f32.vlgmr.msra.gmra.mrb[4].mxu0 %vm32_vm1, %v348_v26 }
 0x2b6   :  { %830 = vmatpush3.msk.msra.mxu0 %vm36_vm0, %v901_v3  ;;  %831 = vmatprep.mubr.msk.f32.mxu0 %vm863_vm2, %v862_v0 }
 0x2b7   :  { %839 = vmatprep.subr.mxu0 %v862_v0 }
 0x388   :  { %v417_v27 = vpop.f32.mrb[4].mxu0 }
 0x389   :  { %v422_v28 = vrot.slane %v417_v27, 5  ;;  %v823_v29 = vpop.f32.mrb[5].mxu0 }
 0x38b   :  { %v424_v30 = vadd.f32 %v422_v28, %v927_v8 }
 0x38d   :  { %852 = vtanh.f32 %v424_v30 }
 0x397   :  { %v853_v31 = vpop.eup %852 }
 0x398   :  { %v747_v32 = vsel %vm746_vm6, %v745_v25, %v853_v31  ;;  %v427_v33 = vrot.slane %v853_v31, 3 }
 0x39a   :  { %827 = vmatmul.mubr.msk.f32.vlgmr.msra.gmra.mrb[4].mxu1 %vm32_vm1, %v427_v33 }
 0x39b   :  { %835 = vmatpush3.msk.msra.mxu1 %vm36_vm0, %v901_v3  ;;  %836 = vmatprep.mubr.msk.f32.mxu1 %vm863_vm2, %v862_v0 }
 0x46d   :  { %v496_v34 = vpop.f32.mrb[4].mxu1 }
 0x46e   :  { %v501_v35 = vrot.slane %v496_v34, 4  ;;  %v828_v36 = vpop.f32.mrb[5].mxu1 }
 0x470   :  { %v503_v37 = vadd.f32 %v501_v35, %v927_v8 }
 0x472   :  { %854 = vtanh.f32 %v503_v37 }
 0x47c   :  { %v855_v38 = vpop.eup %854 }
 0x47d   :  { %v748_v39 = vsel %vm36_vm0, %v747_v32, %v855_v38  ;;  %v506_v40 = vrot.slane %v855_v38, 4 }
 0x47f   :  { %832 = vmatmul.mubr.msk.f32.vlgmr.msra.gmra.mrb[6].mxu0 %vm32_vm1, %v506_v40 }
 0x480   :  { %840 = vmatpush3.msk.msra.mxu0 %vm36_vm0, %v901_v3  ;;  %841 = vmatprep.mubr.msk.f32.mxu0 %vm863_vm2, %v862_v0 }
 0x552   :  { %v575_v41 = vpop.f32.mrb[6].mxu0 }
 0x553   :  { %v580_v42 = vrot.slane %v575_v41, 3  ;;  %v833_v43 = vpop.f32.mrb[7].mxu0 }
 0x555   :  { %v582_v44 = vadd.f32 %v580_v42, %v927_v8 }
 0x557   :  { %856 = vtanh.f32 %v582_v44 }
 0x561   :  { %v857_v45 = vpop.eup %856 }
 0x562   :  { %v750_v46 = vsel %vm749_vm7, %v748_v39, %v857_v45  ;;  %v585_v47 = vrot.slane %v857_v45, 5 }
 0x564   :  { %837 = vmatmul.mubr.msk.f32.vlgmr.msra.gmra.mrb[6].mxu1 %vm32_vm1, %v585_v47 }
 0x637   :  { %v654_v48 = vpop.f32.mrb[6].mxu1 }
 0x638   :  { %v659_v49 = vrot.slane %v654_v48, 2  ;;  %v838_v50 = vpop.f32.mrb[7].mxu1 }
 0x63a   :  { %v661_v51 = vadd.f32 %v659_v49, %v927_v8 }
 0x63c   :  { %858 = vtanh.f32 %v661_v51 }
 0x646   :  { %v859_v52 = vpop.eup %858 }
 0x647   :  { %v752_v53 = vsel %vm751_vm8, %v750_v46, %v859_v52  ;;  %v664_v54 = vrot.slane %v859_v52, 6 }
 0x649   :  { %842 = vmatmul.mubr.msk.f32.vlgmr.msra.gmra.mrb[8].mxu0 %vm32_vm1, %v664_v54 }
 0x71c   :  { %v733_v55 = vpop.f32.mrb[8].mxu0 }
 0x71d   :  { %v738_v56 = vrot.slane %v733_v55, 1  ;;  %v843_v57 = vpop.f32.mrb[9].mxu0 }
 0x71f   :  { %v740_v58 = vadd.f32 %v738_v56, %v927_v8 }
 0x721   :  { %860 = vtanh.f32 %v740_v58 }
 0x72b   :  { %v861_v59 = vpop.eup %860 }
 0x72c   :  { %v754_v60 = vsel %vm753_vm9, %v752_v53, %v861_v59  ;;  %757 = vst.msk [vmem:[#allocation2 - $0x7] sm:$0x80] %vm756_vm10, %v861_v59 }
 0x72d   :  { %755 = vst.msk [vmem:[%s976_s4] sm:$0xff] %vm32_vm1, %v754_v60 }

</bundles_post_ra>
